<compile_context>
chip_gen: v7x
topology: tpu7x:2x2x1
jax: 0.10.0
libtpu: 0.0.40
codegen_flags: <defaults>
</compile_context>

<pallas_src>
import math

import jax
import jax.numpy as jnp
from jax import lax
from jax.experimental import pallas as pl
from jax.experimental.pallas import tpu as pltpu

_EPS = 1e-12            # torch.nn.functional.normalize default eps
_EPS_SQ = _EPS * _EPS   # max(sqrt(s), eps) == sqrt(max(s, eps^2))


def _inv_row_norm_kernel(w_ref, inv_ref):
    """inv_ref[0, n] = 1 / max(||w[n, :]||_2, eps), accumulated over K tiles."""
    k = pl.program_id(1)

    @pl.when(k == 0)
    def _init():
        inv_ref[...] = jnp.zeros_like(inv_ref)

    w = w_ref[...].astype(jnp.float32)                     # (tn, tk)
    ones = jnp.ones((1, w.shape[1]), jnp.float32)
    # Row sum-of-squares produced lane-dense as (1, tn) directly: a tiny MXU
    # contraction instead of an XLU lane-reduce + sublane->lane relayout.
    inv_ref[...] += lax.dot_general(
        ones, w * w,
        dimension_numbers=(((1,), (1,)), ((), ())),
        preferred_element_type=jnp.float32,
    )

    @pl.when(k == pl.num_programs(1) - 1)
    def _finalize():
        inv_ref[...] = lax.rsqrt(jnp.maximum(inv_ref[...], _EPS_SQ))


def _linear_norm_matmul_kernel(x_ref, w_ref, inv_ref, o_ref, acc_ref):
    """o = (x @ w.T) * inv_norm, accumulated over K tiles in f32."""
    k = pl.program_id(2)

    @pl.when(k == 0)
    def _init():
        acc_ref[...] = jnp.zeros_like(acc_ref)

    # (tm, tk) . (tn, tk) contracting K on both operands -> (tm, tn); the MXU
    # consumes a last-dim-contracted RHS natively, so no transpose is built.
    acc_ref[...] += lax.dot_general(
        x_ref[...], w_ref[...],
        dimension_numbers=(((1,), (1,)), ((), ())),
        preferred_element_type=jnp.float32,
    )

    @pl.when(k == pl.num_programs(2) - 1)
    def _finalize():
        # Column scale by 1/||w_row||: (tm, tn) * (1, tn), fused at finalize.
        o_ref[...] = (acc_ref[...] * inv_ref[...]).astype(o_ref.dtype)


def _pick_tile(dim: int, preferred: int) -> int:
    if dim <= preferred:
        return dim
    assert dim % preferred == 0, f"dim {dim} must be a multiple of tile {preferred}"
    return preferred


def _vmem_limit_bytes(tile_bytes: int) -> int:
    # Double-buffered tiles + headroom, clamped to a budget that is safe on
    # every generation (v7x physical VMEM is 64 MiB per TensorCore).
    need = 4 * tile_bytes
    return int(min(max(need, 16 * 1024 * 1024), 48 * 1024 * 1024))


def linear_norm(x: jax.Array, weight: jax.Array, *,
                tm: int = 128, tn: int = 256, tk: int = 512) -> jax.Array:
    """x: (..., K), weight: (N, K) -> (..., N); matches F.linear(x, normalize(w, dim=1))."""
    *lead, K = x.shape
    N, K2 = weight.shape
    assert K == K2, "in_features mismatch"
    x2 = x.reshape(-1, K)
    M = x2.shape[0]

    tm = _pick_tile(M, tm)
    tn = _pick_tile(N, tn)
    tk = _pick_tile(K, tk)

    # --- kernel 1: per-output-row inverse L2 norm of the weight -> (1, N) f32 ---
    inv_tile_bytes = 4 * (tn * tk + tn)
    inv_norm = pl.pallas_call(
        _inv_row_norm_kernel,
        out_shape=jax.ShapeDtypeStruct((1, N), jnp.float32),
        grid_spec=pltpu.PrefetchScalarGridSpec(
            num_scalar_prefetch=0,
            grid=(N // tn, K // tk),
            in_specs=[pl.BlockSpec((tn, tk), lambda j, k: (j, k))],
            out_specs=pl.BlockSpec((1, tn), lambda j, k: (0, j)),
        ),
        compiler_params=pltpu.CompilerParams(
            dimension_semantics=("parallel", "arbitrary"),
            vmem_limit_bytes=_vmem_limit_bytes(inv_tile_bytes),
        ),
    )(weight)

    # --- kernel 2: tiled matmul + column scale by inv_norm ----------------------
    mm_tile_bytes = 4 * (tm * tk + tn * tk + tn + 2 * tm * tn)
    out = pl.pallas_call(
        _linear_norm_matmul_kernel,
        out_shape=jax.ShapeDtypeStruct((M, N), x.dtype),
        grid_spec=pltpu.PrefetchScalarGridSpec(
            num_scalar_prefetch=0,
            grid=(M // tm, N // tn, K // tk),
            in_specs=[
                pl.BlockSpec((tm, tk), lambda i, j, k: (i, k)),   # x tile
                pl.BlockSpec((tn, tk), lambda i, j, k: (j, k)),   # weight tile
                pl.BlockSpec((1, tn), lambda i, j, k: (0, j)),    # inv_norm tile
            ],
            out_specs=pl.BlockSpec((tm, tn), lambda i, j, k: (i, j)),
            scratch_shapes=[pltpu.VMEM((tm, tn), jnp.float32)],
        ),
        compiler_params=pltpu.CompilerParams(
            dimension_semantics=("parallel", "parallel", "arbitrary"),
            vmem_limit_bytes=_vmem_limit_bytes(mm_tile_bytes),
        ),
    )(x2, weight, inv_norm)

    return out.reshape(*lead, N)


if __name__ == "__main__":
    # Small shapes consistent with the module (linear head on an LSTM hidden state).
    in_features = 32
    out_features = 16
    batch = 8

    key = jax.random.PRNGKey(0)
    kx, kw = jax.random.split(key)

    # Deterministic init mirroring kaiming_uniform_(a=sqrt(5)): bound = 1/sqrt(fan_in).
    bound = 1.0 / math.sqrt(in_features)
    weight = jax.random.uniform(
        kw, (out_features, in_features), dtype=jnp.float32,
        minval=-bound, maxval=bound)
    x = jax.random.normal(kx, (batch, in_features), dtype=jnp.float32)

    out = jax.block_until_ready(linear_norm(x, weight))

    # Pure-JAX reference with exact torch.nn.functional.normalize semantics.
    norm = jnp.sqrt(jnp.sum(weight * weight, axis=1, keepdims=True))
    w_ref = weight / jnp.maximum(norm, 1e-12)
    ref = x @ w_ref.T
    assert out.shape == (batch, out_features)
    assert jnp.allclose(out, ref, atol=1e-5, rtol=1e-5), "mismatch vs reference"

    print("KERNEL_OK")
</pallas_src>

<mosaic_0001>
module attributes {stable_mosaic.version = 11 : i64} {
  func.func @_inv_row_norm_kernel(%arg0: i32, %arg1: i32, %arg2: memref<16x32xf32, #tpu.memory_space<vmem>>, %arg3: memref<1x16xf32, #tpu.memory_space<vmem>>) attributes {dimension_semantics = [#tpu.dimension_semantics<parallel>, #tpu.dimension_semantics<arbitrary>], iteration_bounds = array<i64: 1, 1>, scalar_prefetch = 0 : i64, scratch_operands = 0 : i64, tpu.core_type = #tpu.core_type<tc>, window_params = [{transform_indices = @transform_0, window_bounds = array<i64: 16, 32>}, {transform_indices = @transform_1, window_bounds = array<i64: 1, 16>}]} {
    %c0_i32 = arith.constant 0 : i32
    %0 = arith.cmpi eq, %arg1, %c0_i32 : i32
    %1 = arith.extui %0 : i1 to i32
    %c0_i32_0 = arith.constant 0 : i32
    %2 = arith.cmpi ne, %1, %c0_i32_0 : i32
    scf.if %2 {
      %cst_9 = arith.constant 0.000000e+00 : f32
      %13 = vector.broadcast %cst_9 : f32 to vector<1x16xf32>
      %c0_10 = arith.constant 0 : index
      %c0_11 = arith.constant 0 : index
      %14 = vector.load %arg3[%c0_10, %c0_11] : memref<1x16xf32, #tpu.memory_space<vmem>>, vector<1x16xf32>
      tpu.vector_store %arg3[%c0_10, %c0_11], %13 {strides = array<i32>} : memref<1x16xf32, #tpu.memory_space<vmem>>, vector<1x16xf32>,
    } else {
    }
    %c0 = arith.constant 0 : index
    %c0_1 = arith.constant 0 : index
    %3 = vector.load %arg2[%c0, %c0_1] : memref<16x32xf32, #tpu.memory_space<vmem>>, vector<16x32xf32>
    %cst = arith.constant 1.000000e+00 : f32
    %4 = vector.broadcast %cst : f32 to vector<1x32xf32>
    %c0_2 = arith.constant 0 : index
    %c0_3 = arith.constant 0 : index
    %5 = vector.load %arg3[%c0_2, %c0_3] : memref<1x16xf32, #tpu.memory_space<vmem>>, vector<1x16xf32>
    %6 = arith.mulf %3, %3 : vector<16x32xf32>
    %cst_4 = arith.constant dense<0.000000e+00> : vector<1x16xf32>
    %7 = tpu.matmul %4, %6, %cst_4 {dimension_numbers = #tpu.dot_dimension_numbers<[1], [1], [0], [0], [0, 0, 1, 0], [], []>} : vector<1x32xf32>, vector<16x32xf32>, vector<1x16xf32> -> vector<1x16xf32>
    %8 = arith.addf %5, %7 : vector<1x16xf32>
    %c0_5 = arith.constant 0 : index
    %c0_6 = arith.constant 0 : index
    %9 = vector.load %arg3[%c0_5, %c0_6] : memref<1x16xf32, #tpu.memory_space<vmem>>, vector<1x16xf32>
    tpu.vector_store %arg3[%c0_5, %c0_6], %8 {strides = array<i32>} : memref<1x16xf32, #tpu.memory_space<vmem>>, vector<1x16xf32>,
    %c0_i32_7 = arith.constant 0 : i32
    %10 = arith.cmpi eq, %arg1, %c0_i32_7 : i32
    %11 = arith.extui %10 : i1 to i32
    %c0_i32_8 = arith.constant 0 : i32
    %12 = arith.cmpi ne, %11, %c0_i32_8 : i32
    scf.if %12 {
      %c0_9 = arith.constant 0 : index
      %c0_10 = arith.constant 0 : index
      %13 = vector.load %arg3[%c0_9, %c0_10] : memref<1x16xf32, #tpu.memory_space<vmem>>, vector<1x16xf32>
      %cst_11 = arith.constant 1.000000e-24 : f32
      %14 = vector.broadcast %cst_11 : f32 to vector<1x16xf32>
      %15 = arith.maximumf %13, %14 : vector<1x16xf32>
      %16 = math.rsqrt %15 : vector<1x16xf32>
      %c0_12 = arith.constant 0 : index
      %c0_13 = arith.constant 0 : index
      %17 = vector.load %arg3[%c0_12, %c0_13] : memref<1x16xf32, #tpu.memory_space<vmem>>, vector<1x16xf32>
      tpu.vector_store %arg3[%c0_12, %c0_13], %16 {strides = array<i32>} : memref<1x16xf32, #tpu.memory_space<vmem>>, vector<1x16xf32>,
    } else {
    }
    return
  }
  func.func @transform_0(%arg0: i32, %arg1: i32) -> (i32, i32) {
    %c0_i32 = arith.constant 0 : i32
    return %arg0, %arg1 : i32, i32
  }
  func.func @transform_1(%arg0: i32, %arg1: i32) -> (i32, i32) {
    %c0_i32 = arith.constant 0 : i32
    %c0_i32_0 = arith.constant 0 : i32
    return %c0_i32, %arg0 : i32, i32
  }
}

</mosaic_0001>

<bundles_post_ra>
// kernel: tpu_custom_call.1
= control target key start
LH: loop header
LB: loop body
LE: loop exit
PB: predicated region body
PF: predicated region fallthrough
CT: control target
= control target key end

     0   :  { %6 = vsyncpa [#allocation3], 0  ;;  %s259_s0 = inlined_call_operand.hbm [shape: f32[16,32], index: 0, kind: input, shape index: {}]   ;;  %s260_s1 = inlined_call_operand.hbm [shape: f32[1,16], index: 1, kind: output, shape index: {}]  }
   0x1   :  { %7 = vsyncpa [#allocation4], 0  ;;  %s214_s6 = smov [#allocation2]   ;;  %s166_s10 = scalar_lea.hbm %s259_s0, 256 }
   0x2   :  { %s13_s7 = sshll.u32 %s214_s6, 4  ;;  %p167_p0 = scmp.ne.s32.totalorder %s259_s0, %s166_s10  ;;  %s14_s7 = int_to_ptr.vmem [resolvable:$true] %s13_s7 }
   0x3   :  { %p170_p1 = scmp.lt.u32.totalorder %s166_s10, %s259_s0 }
   0x5   :  { %p172_p2 = pnand %p170_p1, %p167_p0 }
   0x7   :  { %175 = shalt.err (!%p172_p2)
}
   0x8   :  { %s176_s15 = scalar_lea.vmem %s14_s7, 256  ;;  %p181_p4 = scmp.lt.s32.totalorder %s14_s7, %s14_s7 }
   0x9   :  { %p177_p3 = scmp.ne.s32.totalorder %s14_s7, %s176_s15  ;;  %p182_p5 = scmp.lt.s32.totalorder %s176_s15, %s176_s15 }
   0xb   :  { %p183_p6 = por %p182_p5, %p181_p4 }
   0xd   :  { %p184_p7 = pnand %p183_p6, %p177_p3 }
   0xf   :  { %187 = shalt.err (!%p184_p7)
}
  0x10   :  { %s215_s16 = smov 128   ;;  %s216_s17 = smov 8  }
  0x11   :  { %19 = dma.hbm_to_vmem [thread:$0]  %s259_s0, 256, %s14_s7, [#allocation3], %s215_s16, %s215_s16, %s216_s17  }
  0x12   :  { %210 = dma.done.wait [#allocation3], 256  }
  0x13   :  { %211 = vsyncadd [#allocation3], 4294967040  ;;  %vm27_vm0 = vcmask 122880   ;;  %v217_v0 = vmov 0.0|0.0   ;;  %v218_v1 = vmov 0.0   ;;  %vm219_vm1 = vmmov 0  }
  0x14   :  { %152 = vmatprep.subr.bf16.mxu0 %v217_v0  ;;  %28 = vst.msk [vmem:[#allocation5] sm:$0x1] %vm27_vm0, %v218_v1  ;;  %149 = vmatprep.mubr.msk.f32.mxu0 %vm219_vm1, %v218_v1  ;;  %vm34_vm2 = vcmask 261120   ;;  %v29_v2 = vld [vmem:[#allocation2] sm:$0xff]  ;;  %v30_v3 = vld [vmem:[#allocation2 + $0x8] sm:$0xff]  ;;  %v220_v7 = vmov 1.0  }
  0x15   :  { %v32_v4 = vmul.f32 %v29_v2, %v29_v2  ;;  %v33_v5 = vmul.f32 %v30_v3, %v30_v3  ;;  %vm154_vm3 = vmpackc.low %vm34_vm2, %vm34_vm2  ;;  %s221_s0 = smov [#allocation5]  }
  0x16   :  { %s130_s20 = sshll.u32 %s221_s0, 4  ;;  %s131_s20 = int_to_ptr.vmem [resolvable:$true] %s130_s20 }
  0x17   :  { %v153_v6 = vpack.c.bf16 %v33_v5, %v32_v4  ;;  %s188_s21 = scalar_lea.vmem %s131_s20, 16  ;;  %s192_s22 = scalar_lea.vmem %s131_s20, 32 }
  0x18   :  { %p189_p8 = scmp.ne.s32.totalorder %s131_s20, %s188_s21  ;;  %p193_p9 = scmp.lt.s32.totalorder %s131_s20, %s131_s20 }
  0x19   :  { %155 = vmatpush3.bf16.xpose.msk.msra.mxu0 %vm154_vm3, %v153_v6  ;;  %p194_p10 = scmp.lt.s32.totalorder %s192_s22, %s188_s21 }
  0x1b   :  { %v31_v8 = vld [vmem:[#allocation5] sm:$0x1]  ;;  %p195_p11 = por %p194_p10, %p193_p9 }
  0x1d   :  { %p196_p12 = pnand %p195_p11, %p189_p8 }
  0x20   :  { %150 = vmatmul.mubr.msk.f32.vlgmr.msra.gmra.mrb[0].mxu0 %vm34_vm2, %v220_v7 }
  0xf3   :  { %v110_v9 = vpop.f32.mrb[0].mxu0 }
  0xf4   :  { %v114_v10 = vadd.f32 %v110_v9, %v31_v8  ;;  %v151_v11 = vpop.f32.mrb[1].mxu0 }
  0xf6   :  { %116 = vst.msk [vmem:[#allocation5] sm:$0x1] %vm27_vm0, %v114_v10 }
  0xfd   :  { %v120_v12 = vld [vmem:[#allocation5] sm:$0x1] }
  0xfe   :  { %v121_v13 = vmax.f32 %v120_v12, 1e-24 }
 0x100   :  { %164 = vrsqrt.f32 %v121_v13 }
 0x10a   :  { %v165_v14 = vpop.eup %164 }
 0x10b   :  { %123 = vst.msk [vmem:[#allocation5] sm:$0x1] %vm27_vm0, %v165_v14 }
 0x10c   :  { %199 = shalt.err (!%p196_p12)
}
 0x10d   :  { %s200_s25 = scalar_lea.hbm %s260_s1, 16 }
 0x10e   :  { %p201_p13 = scmp.ne.s32.totalorder %s260_s1, %s200_s25  ;;  %p204_p0 = scmp.lt.u32.totalorder %s200_s25, %s260_s1 }
 0x110   :  { %p206_p1 = pnand %p204_p0, %p201_p13 }
 0x112   :  { %209 = shalt.err (!%p206_p1)
}
 0x113   :  { %133 = dma.vmem_to_hbm [thread:$0]  %s131_s20, 16, %s260_s1, [#allocation4]  }
 0x114   :  { %212 = dma.done.wait [#allocation4], 16  }
 0x115   :  { %213 = vsyncadd [#allocation4], 4294967280 }
 0x116   :  { %137 = vsyncpa [#allocation3], 1 }
 0x117   :  { %138 = vsyncpa [#allocation4], 1 }

</bundles_post_ra>
